<compile_context>
chip_gen: v6e
topology: v6e:2x2x1
jax: 0.10.0
libtpu: 0.0.40
codegen_flags: <defaults>
</compile_context>

<pallas_src>
import functools

import jax
import jax.numpy as jnp
from jax.experimental import pallas as pl
from jax.experimental.pallas import tpu as pltpu

N_ELEM = 11
N_ELEM_FEAT = 30
N_ELEM_FEAT_P1 = N_ELEM_FEAT + 1            # 31
N_PROC = 3
CONV_FLAT = N_ELEM * N_ELEM_FEAT_P1         # 341
FC_IN = CONV_FLAT + N_PROC                  # 344
FC_HID = 128
PAD_DIM = 384                               # 3 * 128 lanes
BIAS_COL = FC_IN                            # 344: constant-1 column of the input slab
ELU_ALPHA = 0.2
BN_EPS = 1e-5

DEFAULT_BLOCK_B = 512                       # batch tile (multiple of 16)
_SUBLANE = 16                               # bf16 sublane packing


def _elu(x, alpha=ELU_ALPHA):
    # ELU(alpha): x if x > 0 else alpha * (exp(x) - 1); exp guarded against overflow.
    return jnp.where(x > 0, x, alpha * (jnp.exp(jnp.minimum(x, 0.0)) - 1.0))


# ---------------------------------------------------------------------------
# Fused Pallas kernel: whole forward pass on one batch tile.
# ---------------------------------------------------------------------------
def _fused_kernel(x_ref, w_in1_ref, w2_ref, w_fc1_ref, w_res_ref, fc2w_ref, fc2b_ref,
                  o_ref):
    x = x_ref[...]                                            # (TB, 384) compute dtype

    def mxu(a, b_ref):
        return jnp.dot(a.astype(b_ref.dtype), b_ref[...],
                       preferred_element_type=jnp.float32)

    # conv1 + folded BN1 (+ bias via the constant-1 lane) + ELU.
    # Output is already in NCHW-flat order k = c*11 + e (PyTorch's first reshape).
    a1 = _elu(mxu(x, w_in1_ref))                              # (TB, 384) f32
    # conv2 + folded BN2 + ELU on the reshaped (11, 31) view (block-diagonal weight);
    # output in flat order m = c2*11 + i (PyTorch's second reshape).
    a2 = _elu(mxu(a1, w2_ref))                                # (TB, 384) f32
    # fc1 = main path on the conv2 output (flat order already matches fc1's input view)
    #       + residual/proc path taken straight off the input slab (row-gathered weight)
    #       + bias on the constant-1 lane; then ELU.
    h = _elu(mxu(a2, w_fc1_ref) + mxu(x, w_res_ref))          # (TB, 128) f32
    # TODO(synk): Dropout(0.5) is identity in eval mode; training-mode dropout (and BN
    # batch statistics) are not implemented.
    # fc2 (128 -> 1): VPU multiply + lane reduction instead of an N=1 MXU pass.
    o_ref[...] = jnp.sum(h * fc2w_ref[...], axis=-1, keepdims=True) + fc2b_ref[...]


# ---------------------------------------------------------------------------
# Host-side one-time weight preparation: fold BN, build padded fused matrices.
# ---------------------------------------------------------------------------
def prepare_kernel_params(params, compute_dtype=jnp.bfloat16):
    E, F, C = N_ELEM, N_ELEM_FEAT, N_ELEM_FEAT_P1
    f32 = jnp.float32
    eyeE = jnp.eye(E, dtype=f32)

    def fold_bn(w, b, g, beta, mu, var):
        # w: (C_out, K) conv weight (squeezed). Fold eval-mode BN into weight/bias.
        scale = g / jnp.sqrt(var + BN_EPS)                                   # (C_out,)
        return (w * scale[:, None]).T, (b - mu) * scale + beta               # (K,C_out)

    w1t, b1f = fold_bn(params["w1"], params["b1"], params["bn1_g"], params["bn1_b"],
                       params["bn1_m"], params["bn1_v"])
    w2t, b2f = fold_bn(params["w2"], params["b2"], params["bn2_g"], params["bn2_b"],
                       params["bn2_m"], params["bn2_v"])

    # W_in1 (384, 384): fused input slab -> conv1(+BN1) pre-activation in flat order
    # k = c*11 + e; bias rides on the constant-1 column, which also carries itself on.
    comp_blk = (w1t[0][None, :, None] * eyeE[:, None, :]).reshape(E, C * E)  # (11, 341)
    ef_blk = (w1t[1:][None, :, :, None]
              * eyeE[:, None, None, :]).reshape(E * F, C * E)                # (330, 341)
    w_in1 = jnp.zeros((PAD_DIM, PAD_DIM), f32)
    w_in1 = w_in1.at[:E, :CONV_FLAT].set(comp_blk)
    w_in1 = w_in1.at[E:E + E * F, :CONV_FLAT].set(ef_blk)
    w_in1 = w_in1.at[BIAS_COL, :CONV_FLAT].set(jnp.repeat(b1f, E))
    w_in1 = w_in1.at[BIAS_COL, BIAS_COL].set(1.0)

    # W2 (384, 384): block-diagonal conv2(+BN2) on the reshaped (11, 31) view.
    # Rows are a1's flat index i*31+j, cols are conv2's flat output m = c2*11 + i.
    w2_blk = (w2t[None, :, :, None] * eyeE[:, None, None, :]).reshape(E * C, C * E)
    w2 = jnp.zeros((PAD_DIM, PAD_DIM), f32)
    w2 = w2.at[:CONV_FLAT, :CONV_FLAT].set(w2_blk)
    w2 = w2.at[BIAS_COL, :CONV_FLAT].set(jnp.repeat(b2f, E))
    w2 = w2.at[BIAS_COL, BIAS_COL].set(1.0)

    # fc1 split into (a) main path on the conv2 output (same flat index as fc1's input
    # view) with the bias on the constant-1 row, and (b) residual + proc path whose rows
    # are re-gathered into the input-slab order.
    fc1_wt = params["fc1_w"].T.astype(f32)                                   # (344, 128)
    w_fc1 = jnp.zeros((PAD_DIM, FC_HID), f32)
    w_fc1 = w_fc1.at[:CONV_FLAT].set(fc1_wt[:CONV_FLAT])
    w_fc1 = w_fc1.at[BIAS_COL].set(params["fc1_b"].astype(f32))

    idx_comp = jnp.arange(E) * C                                             # q = e*31
    idx_ef = (jnp.arange(E)[:, None] * C + 1 + jnp.arange(F)[None, :]).reshape(-1)
    idx_proc = CONV_FLAT + jnp.arange(N_PROC)
    gather = jnp.concatenate([idx_comp, idx_ef, idx_proc])                   # (344,)
    w_res = jnp.zeros((PAD_DIM, FC_HID), f32).at[:FC_IN].set(fc1_wt[gather])

    return {
        "w_in1": w_in1.astype(compute_dtype),
        "w2": w2.astype(compute_dtype),
        "w_fc1": w_fc1.astype(compute_dtype),
        "w_res": w_res.astype(compute_dtype),
        "fc2w": params["fc2_w"].reshape(1, FC_HID).astype(f32),
        "fc2b": params["fc2_b"].reshape(1, 1).astype(f32),
    }


# ---------------------------------------------------------------------------
# Wrapper: input-slab fusion + tiling + pallas_call
# ---------------------------------------------------------------------------
def build_input_slab(comp, elem_feature, proc, compute_dtype):
    """Fuse (comp | elem_feature | proc | 1.0 | zero-pad) into one lane-dense (B, 384)
    slab; the constant-1 column (index 344) carries all folded biases."""
    B = comp.shape[0]
    slab = jnp.concatenate(
        [comp.reshape(B, N_ELEM).astype(jnp.float32),
         elem_feature.reshape(B, N_ELEM * N_ELEM_FEAT).astype(jnp.float32),
         proc.reshape(B, N_PROC).astype(jnp.float32),
         jnp.ones((B, 1), jnp.float32),
         jnp.zeros((B, PAD_DIM - FC_IN - 1), jnp.float32)],
        axis=-1)
    return slab.astype(compute_dtype)


def _pick_tile(batch, block_b):
    """Batch tile: multiple of 16 sublanes (bf16-safe), capped at block_b, and giving at
    least two grid steps when the batch allows (feeds both TensorCores on v7x)."""
    block_b = max(_SUBLANE, (block_b // _SUBLANE) * _SUBLANE)
    if batch <= _SUBLANE:
        return batch                     # single block == full array extent (allowed)
    half = -(-batch // 2)                # cdiv(batch, 2) -> aim for >= 2 grid steps
    tb = -(-half // _SUBLANE) * _SUBLANE
    return min(tb, block_b)


def _fused_forward(kparams, xs, *, block_b):
    B = xs.shape[0]
    tb = _pick_tile(B, block_b)
    grid_b = pl.cdiv(B, tb)              # ragged tail handled by Pallas (no host pad)
    weights = [kparams[k] for k in ("w_in1", "w2", "w_fc1", "w_res", "fc2w", "fc2b")]

    def const_spec(arr):
        # Full-array block, constant index map -> stays VMEM-resident across grid steps.
        return pl.BlockSpec(arr.shape, lambda i: (0, 0))

    return pl.pallas_call(
        _fused_kernel,
        out_shape=jax.ShapeDtypeStruct((B, 1), jnp.float32),
        grid=(grid_b,),
        in_specs=([pl.BlockSpec((tb, PAD_DIM), lambda i: (i, 0))]
                  + [const_spec(w) for w in weights]),
        out_specs=pl.BlockSpec((tb, 1), lambda i: (i, 0)),
        compiler_params=pltpu.CompilerParams(
            dimension_semantics=("parallel",)),      # megacore sharding on v7x
    )(xs, *weights)


@functools.partial(jax.jit, static_argnames=("block_b",))
def cnn_dnn_forward(kparams, comp, elem_feature, proc, block_b=DEFAULT_BLOCK_B):
    """Eval-mode CnnDnnModel.forward. `kparams` must come from prepare_kernel_params()
    (one-time host prep, hoisted out of the per-call path)."""
    xs = build_input_slab(comp, elem_feature, proc, kparams["w_in1"].dtype)
    return _fused_forward(kparams, xs, block_b=block_b)


# ---------------------------------------------------------------------------
# Pure-JAX reference mirroring the PyTorch forward (for validation)
# ---------------------------------------------------------------------------
def reference_forward(params, comp, elem_feature, proc):
    B = comp.shape[0]
    x = jnp.concatenate([comp.astype(jnp.float32),
                         elem_feature.astype(jnp.float32)], axis=-1)     # (B,1,11,31)
    residual = x

    def conv_bn_elu(xin, w, b, g, beta, mu, var):
        # Conv2d(1, 31, kernel=(1,31)) on (B,1,11,31) -> (B,31,11); eval BN; ELU(0.2).
        y = jnp.einsum("bej,cj->bce", xin[:, 0], w) + b[None, :, None]
        y = (y - mu[None, :, None]) * (g[None, :, None]
             / jnp.sqrt(var[None, :, None] + BN_EPS)) + beta[None, :, None]
        return _elu(y)

    y1 = conv_bn_elu(x, params["w1"], params["b1"], params["bn1_g"], params["bn1_b"],
                     params["bn1_m"], params["bn1_v"])
    x1 = y1.reshape(B, 1, N_ELEM, N_ELEM_FEAT_P1)            # torch .reshape semantics
    y2 = conv_bn_elu(x1, params["w2"], params["b2"], params["bn2_g"], params["bn2_b"],
                     params["bn2_m"], params["bn2_v"])
    x2 = y2.reshape(B, 1, N_ELEM, N_ELEM_FEAT_P1) + residual
    flat = x2.reshape(B, CONV_FLAT)
    feat = jnp.concatenate([flat, proc.reshape(B, N_PROC).astype(jnp.float32)], axis=-1)
    h = _elu(feat @ params["fc1_w"].T + params["fc1_b"])
    # Dropout(0.5) is identity in eval mode.
    return h @ params["fc2_w"].T + params["fc2_b"]


# ---------------------------------------------------------------------------
# Deterministic parameter initialization (mimics reset_parameters; BN as-if trained)
# ---------------------------------------------------------------------------
def init_params(key):
    ks = jax.random.split(key, 16)
    C = N_ELEM_FEAT_P1
    lim_conv = 1.0 / jnp.sqrt(float(C))       # hidden_init: fan = weight.size(0) = 31
    lim_fc1 = 1.0 / jnp.sqrt(float(FC_HID))   # hidden_init: fan = weight.size(0) = 128

    def unif(k, shape, lim):
        return jax.random.uniform(k, shape, jnp.float32, -lim, lim)

    return {
        "w1": unif(ks[0], (C, C), lim_conv),          # conv1.weight[c_out, 0, 0, j]
        "b1": unif(ks[1], (C,), lim_conv),
        "w2": unif(ks[2], (C, C), lim_conv),
        "b2": unif(ks[3], (C,), lim_conv),
        # non-trivial (as-if-trained) BatchNorm stats so the eval-mode folding is tested
        "bn1_g": 1.0 + 0.3 * jax.random.normal(ks[4], (C,), jnp.float32),
        "bn1_b": 0.1 * jax.random.normal(ks[5], (C,), jnp.float32),
        "bn1_m": 0.1 * jax.random.normal(ks[6], (C,), jnp.float32),
        "bn1_v": jax.random.uniform(ks[7], (C,), jnp.float32, 0.5, 1.5),
        "bn2_g": 1.0 + 0.3 * jax.random.normal(ks[8], (C,), jnp.float32),
        "bn2_b": 0.1 * jax.random.normal(ks[9], (C,), jnp.float32),
        "bn2_m": 0.1 * jax.random.normal(ks[10], (C,), jnp.float32),
        "bn2_v": jax.random.uniform(ks[11], (C,), jnp.float32, 0.5, 1.5),
        "fc1_w": unif(ks[12], (FC_HID, FC_IN), lim_fc1),
        "fc1_b": unif(ks[13], (FC_HID,), 1.0 / jnp.sqrt(float(FC_IN))),
        "fc2_w": unif(ks[14], (1, FC_HID), 0.003),
        "fc2_b": unif(ks[15], (1,), 1.0 / jnp.sqrt(float(FC_HID))),
    }


if __name__ == "__main__":
    key = jax.random.PRNGKey(0)
    k_par, k_c1, k_f1, k_p1, k_c2, k_f2, k_p2 = jax.random.split(key, 7)

    params = init_params(k_par)
    kparams = prepare_kernel_params(params)        # one-time host prep (hoisted)

    def make_inputs(kc, kf, kp, B):
        comp = jax.random.uniform(kc, (B, 1, N_ELEM, 1), jnp.float32)
        ef = jax.random.normal(kf, (B, 1, N_ELEM, N_ELEM_FEAT), jnp.float32)
        pr = jax.random.normal(kp, (B, 1, N_PROC, 1), jnp.float32)
        return comp, ef, pr

    # Small-batch sanity check (single full-array block).
    comp, ef, pr = make_inputs(k_c1, k_f1, k_p1, 4)
    out = jax.block_until_ready(cnn_dnn_forward(kparams, comp, ef, pr))
    ref = reference_forward(params, comp, ef, pr)
    assert out.shape == (4, 1), out.shape
    assert jnp.allclose(out, ref, atol=1e-2, rtol=1e-2), \
        float(jnp.max(jnp.abs(out - ref)))

    # Multi-step grid with a ragged tail (exercises tiling + masked partial last block).
    comp, ef, pr = make_inputs(k_c2, k_f2, k_p2, 200)
    out2 = jax.block_until_ready(cnn_dnn_forward(kparams, comp, ef, pr, block_b=64))
    ref2 = reference_forward(params, comp, ef, pr)
    assert out2.shape == (200, 1), out2.shape
    assert jnp.allclose(out2, ref2, atol=1e-2, rtol=1e-2), \
        float(jnp.max(jnp.abs(out2 - ref2)))

    print("KERNEL_OK")
</pallas_src>

<mosaic_0001>
module attributes {stable_mosaic.version = 11 : i64} {
  func.func @_fused_kernel(%arg0: i32, %arg1: memref<4x384xbf16, #tpu.memory_space<vmem>>, %arg2: memref<384x384xbf16, #tpu.memory_space<vmem>>, %arg3: memref<384x384xbf16, #tpu.memory_space<vmem>>, %arg4: memref<384x128xbf16, #tpu.memory_space<vmem>>, %arg5: memref<384x128xbf16, #tpu.memory_space<vmem>>, %arg6: memref<1x128xf32, #tpu.memory_space<vmem>>, %arg7: memref<1x1xf32, #tpu.memory_space<vmem>>, %arg8: memref<4x1xf32, #tpu.memory_space<vmem>>) attributes {dimension_semantics = [#tpu.dimension_semantics<parallel>], iteration_bounds = array<i64: 1>, scalar_prefetch = 0 : i64, scratch_operands = 0 : i64, tpu.core_type = #tpu.core_type<tc>, window_params = [{transform_indices = @transform_0, window_bounds = array<i64: 4, 384>}, {pipeline_mode = #tpu.pipeline_mode<synchronous>, transform_indices = @transform_1, window_bounds = array<i64: 384, 384>}, {pipeline_mode = #tpu.pipeline_mode<synchronous>, transform_indices = @transform_2, window_bounds = array<i64: 384, 384>}, {pipeline_mode = #tpu.pipeline_mode<synchronous>, transform_indices = @transform_3, window_bounds = array<i64: 384, 128>}, {pipeline_mode = #tpu.pipeline_mode<synchronous>, transform_indices = @transform_4, window_bounds = array<i64: 384, 128>}, {pipeline_mode = #tpu.pipeline_mode<synchronous>, transform_indices = @transform_5, window_bounds = array<i64: 1, 128>}, {pipeline_mode = #tpu.pipeline_mode<synchronous>, transform_indices = @transform_6, window_bounds = array<i64: 1, 1>}, {transform_indices = @transform_7, window_bounds = array<i64: 4, 1>}]} {
    %c0 = arith.constant 0 : index
    %c0_0 = arith.constant 0 : index
    %0 = vector.load %arg1[%c0, %c0_0] : memref<4x384xbf16, #tpu.memory_space<vmem>>, vector<4x384xbf16>
    %c0_1 = arith.constant 0 : index
    %c0_2 = arith.constant 0 : index
    %1 = vector.load %arg2[%c0_1, %c0_2] : memref<384x384xbf16, #tpu.memory_space<vmem>>, vector<384x384xbf16>
    %cst = arith.constant dense<0.000000e+00> : vector<4x384xf32>
    %2 = tpu.matmul %0, %1, %cst {dimension_numbers = #tpu.dot_dimension_numbers<[1], [0], [0], [1], [0, 0, 1, 1], [], []>} : vector<4x384xbf16>, vector<384x384xbf16>, vector<4x384xf32> -> vector<4x384xf32>
    %cst_3 = arith.constant 0.000000e+00 : f32
    %3 = vector.broadcast %cst_3 : f32 to vector<4x384xf32>
    %4 = arith.cmpf ogt, %2, %3 : vector<4x384xf32>
    %cst_4 = arith.constant 0.000000e+00 : f32
    %5 = vector.broadcast %cst_4 : f32 to vector<4x384xf32>
    %6 = arith.minimumf %2, %5 : vector<4x384xf32>
    %7 = math.exp %6 : vector<4x384xf32>
    %cst_5 = arith.constant 1.000000e+00 : f32
    %8 = vector.broadcast %cst_5 : f32 to vector<4x384xf32>
    %9 = arith.subf %7, %8 : vector<4x384xf32>
    %cst_6 = arith.constant 2.000000e-01 : f32
    %10 = vector.broadcast %cst_6 : f32 to vector<4x384xf32>
    %11 = arith.mulf %10, %9 : vector<4x384xf32>
    %12 = arith.select %4, %2, %11 : vector<4x384xi1>, vector<4x384xf32>
    %13 = arith.truncf %12 : vector<4x384xf32> to vector<4x384xbf16>
    %c0_7 = arith.constant 0 : index
    %c0_8 = arith.constant 0 : index
    %14 = vector.load %arg3[%c0_7, %c0_8] : memref<384x384xbf16, #tpu.memory_space<vmem>>, vector<384x384xbf16>
    %cst_9 = arith.constant dense<0.000000e+00> : vector<4x384xf32>
    %15 = tpu.matmul %13, %14, %cst_9 {dimension_numbers = #tpu.dot_dimension_numbers<[1], [0], [0], [1], [0, 0, 1, 1], [], []>} : vector<4x384xbf16>, vector<384x384xbf16>, vector<4x384xf32> -> vector<4x384xf32>
    %cst_10 = arith.constant 0.000000e+00 : f32
    %16 = vector.broadcast %cst_10 : f32 to vector<4x384xf32>
    %17 = arith.cmpf ogt, %15, %16 : vector<4x384xf32>
    %cst_11 = arith.constant 0.000000e+00 : f32
    %18 = vector.broadcast %cst_11 : f32 to vector<4x384xf32>
    %19 = arith.minimumf %15, %18 : vector<4x384xf32>
    %20 = math.exp %19 : vector<4x384xf32>
    %cst_12 = arith.constant 1.000000e+00 : f32
    %21 = vector.broadcast %cst_12 : f32 to vector<4x384xf32>
    %22 = arith.subf %20, %21 : vector<4x384xf32>
    %cst_13 = arith.constant 2.000000e-01 : f32
    %23 = vector.broadcast %cst_13 : f32 to vector<4x384xf32>
    %24 = arith.mulf %23, %22 : vector<4x384xf32>
    %25 = arith.select %17, %15, %24 : vector<4x384xi1>, vector<4x384xf32>
    %26 = arith.truncf %25 : vector<4x384xf32> to vector<4x384xbf16>
    %c0_14 = arith.constant 0 : index
    %c0_15 = arith.constant 0 : index
    %27 = vector.load %arg4[%c0_14, %c0_15] : memref<384x128xbf16, #tpu.memory_space<vmem>>, vector<384x128xbf16>
    %cst_16 = arith.constant dense<0.000000e+00> : vector<4x128xf32>
    %28 = tpu.matmul %26, %27, %cst_16 {dimension_numbers = #tpu.dot_dimension_numbers<[1], [0], [0], [1], [0, 0, 1, 1], [], []>} : vector<4x384xbf16>, vector<384x128xbf16>, vector<4x128xf32> -> vector<4x128xf32>
    %c0_17 = arith.constant 0 : index
    %c0_18 = arith.constant 0 : index
    %29 = vector.load %arg5[%c0_17, %c0_18] : memref<384x128xbf16, #tpu.memory_space<vmem>>, vector<384x128xbf16>
    %cst_19 = arith.constant dense<0.000000e+00> : vector<4x128xf32>
    %30 = tpu.matmul %0, %29, %cst_19 {dimension_numbers = #tpu.dot_dimension_numbers<[1], [0], [0], [1], [0, 0, 1, 1], [], []>} : vector<4x384xbf16>, vector<384x128xbf16>, vector<4x128xf32> -> vector<4x128xf32>
    %31 = arith.addf %28, %30 : vector<4x128xf32>
    %cst_20 = arith.constant 0.000000e+00 : f32
    %32 = vector.broadcast %cst_20 : f32 to vector<4x128xf32>
    %33 = arith.cmpf ogt, %31, %32 : vector<4x128xf32>
    %cst_21 = arith.constant 0.000000e+00 : f32
    %34 = vector.broadcast %cst_21 : f32 to vector<4x128xf32>
    %35 = arith.minimumf %31, %34 : vector<4x128xf32>
    %36 = math.exp %35 : vector<4x128xf32>
    %cst_22 = arith.constant 1.000000e+00 : f32
    %37 = vector.broadcast %cst_22 : f32 to vector<4x128xf32>
    %38 = arith.subf %36, %37 : vector<4x128xf32>
    %cst_23 = arith.constant 2.000000e-01 : f32
    %39 = vector.broadcast %cst_23 : f32 to vector<4x128xf32>
    %40 = arith.mulf %39, %38 : vector<4x128xf32>
    %41 = arith.select %33, %31, %40 : vector<4x128xi1>, vector<4x128xf32>
    %c0_24 = arith.constant 0 : index
    %c0_25 = arith.constant 0 : index
    %42 = vector.load %arg6[%c0_24, %c0_25] : memref<1x128xf32, #tpu.memory_space<vmem>>, vector<1x128xf32>
    %43 = vector.broadcast %42 : vector<1x128xf32> to vector<4x128xf32>
    %44 = arith.mulf %41, %43 : vector<4x128xf32>
    %cst_26 = arith.constant dense<0.000000e+00> : vector<4xf32>
    %45 = vector.multi_reduction <add>, %44, %cst_26 [1] : vector<4x128xf32> to vector<4xf32>
    %46 = vector.shape_cast %45 : vector<4xf32> to vector<4x1xf32>
    %c0_27 = arith.constant 0 : index
    %c0_28 = arith.constant 0 : index
    %47 = vector.load %arg7[%c0_27, %c0_28] : memref<1x1xf32, #tpu.memory_space<vmem>>, vector<1x1xf32>
    %48 = vector.broadcast %47 : vector<1x1xf32> to vector<4x1xf32>
    %49 = arith.addf %46, %48 : vector<4x1xf32>
    %c0_29 = arith.constant 0 : index
    %c0_30 = arith.constant 0 : index
    %50 = vector.load %arg8[%c0_29, %c0_30] : memref<4x1xf32, #tpu.memory_space<vmem>>, vector<4x1xf32>
    tpu.vector_store %arg8[%c0_29, %c0_30], %49 {strides = array<i32>} : memref<4x1xf32, #tpu.memory_space<vmem>>, vector<4x1xf32>,
    return
  }
  func.func @transform_0(%arg0: i32) -> (i32, i32) {
    %c0_i32 = arith.constant 0 : i32
    %c0_i32_0 = arith.constant 0 : i32
    return %arg0, %c0_i32 : i32, i32
  }
  func.func @transform_1(%arg0: i32) -> (i32, i32) {
    %c0_i32 = arith.constant 0 : i32
    %c0_i32_0 = arith.constant 0 : i32
    %c0_i32_1 = arith.constant 0 : i32
    return %c0_i32, %c0_i32_0 : i32, i32
  }
  func.func @transform_2(%arg0: i32) -> (i32, i32) {
    %c0_i32 = arith.constant 0 : i32
    %c0_i32_0 = arith.constant 0 : i32
    %c0_i32_1 = arith.constant 0 : i32
    return %c0_i32, %c0_i32_0 : i32, i32
  }
  func.func @transform_3(%arg0: i32) -> (i32, i32) {
    %c0_i32 = arith.constant 0 : i32
    %c0_i32_0 = arith.constant 0 : i32
    %c0_i32_1 = arith.constant 0 : i32
    return %c0_i32, %c0_i32_0 : i32, i32
  }
  func.func @transform_4(%arg0: i32) -> (i32, i32) {
    %c0_i32 = arith.constant 0 : i32
    %c0_i32_0 = arith.constant 0 : i32
    %c0_i32_1 = arith.constant 0 : i32
    return %c0_i32, %c0_i32_0 : i32, i32
  }
  func.func @transform_5(%arg0: i32) -> (i32, i32) {
    %c0_i32 = arith.constant 0 : i32
    %c0_i32_0 = arith.constant 0 : i32
    %c0_i32_1 = arith.constant 0 : i32
    return %c0_i32, %c0_i32_0 : i32, i32
  }
  func.func @transform_6(%arg0: i32) -> (i32, i32) {
    %c0_i32 = arith.constant 0 : i32
    %c0_i32_0 = arith.constant 0 : i32
    %c0_i32_1 = arith.constant 0 : i32
    return %c0_i32, %c0_i32_0 : i32, i32
  }
  func.func @transform_7(%arg0: i32) -> (i32, i32) {
    %c0_i32 = arith.constant 0 : i32
    %c0_i32_0 = arith.constant 0 : i32
    return %arg0, %c0_i32 : i32, i32
  }
}

</mosaic_0001>

<bundles_post_ra>
// kernel: cnn_dnn_forward.1
= control target key start
LH: loop header
LB: loop body
LE: loop exit
PB: predicated region body
PF: predicated region fallthrough
CT: control target
= control target key end

     0   :  { %s2914_s0 = inlined_call_operand.vmem [shape: bf16[4,384], index: 0, kind: input, shape index: {}]   ;;  %s2915_s1 = inlined_call_operand.hbm [shape: bf16[384,384], index: 1, kind: input, shape index: {}]   ;;  %s2916_s2 = inlined_call_operand.hbm [shape: bf16[384,384], index: 2, kind: input, shape index: {}]   ;;  %s2917_s3 = inlined_call_operand.hbm [shape: bf16[384,128], index: 3, kind: input, shape index: {}]   ;;  %s2918_s4 = inlined_call_operand.hbm [shape: bf16[384,128], index: 4, kind: input, shape index: {}]   ;;  %s2919_s5 = inlined_call_operand.vmem [shape: f32[1,128], index: 5, kind: input, shape index: {}]   ;;  %s2920_s6 = inlined_call_operand.<no memory space> [shape: f32[1,1], index: 6, kind: input, shape index: {}]   ;;  %s2921_s7 = inlined_call_operand.vmem [shape: f32[4,1], index: 7, kind: output, shape index: {}]  }
   0x1   :  { %v12_v0 = vstv %s2920_s6 }
   0x2   :  { %13 = vst [vmem:[#allocation2] sm:$0x1] %v12_v0 }
   0x3   :  { %14 = vsyncpa [#allocation4], 0 }
   0x4   :  { %15 = vsyncpa [#allocation6], 0 }
   0x5   :  { %16 = vsyncpa [#allocation9], 0  ;;  %s2775_s26 = smov [#allocation5]   ;;  %s2776_s28 = smov [#allocation3]  }
   0x6   :  { %s36_s27 = sshll.u32 %s2775_s26, 4  ;;  %s24_s29 = sshll.u32 %s2776_s28, 4  ;;  %s37_s27 = int_to_ptr.vmem [resolvable:$true] %s36_s27  ;;  %s25_s29 = int_to_ptr.vmem [resolvable:$true] %s24_s29 }
   0x7   :  { %s2697_s30 = scalar_lea.vmem %s37_s27, 9216  ;;  %p2702_p1 = scmp.lt.s32.totalorder %s37_s27, %s37_s27 }
   0x8   :  { %p2698_p0 = scmp.ne.s32.totalorder %s37_s27, %s2697_s30  ;;  %p2703_p2 = scmp.lt.s32.totalorder %s2697_s30, %s2697_s30 }
   0xa   :  { %p2704_p3 = por %p2703_p2, %p2702_p1 }
   0xc   :  { %p2705_p4 = pnand %p2704_p3, %p2698_p0 }
   0xe   :  { %2708 = shalt.err (!%p2705_p4)
}
   0xf   :  { %s2777_s8 = smov 192   ;;  %s2778_s9 = smov 12  }
  0x10   :  { %42 = dma.hbm_to_vmem [thread:$0]  %s2916_s2, 9216, %s37_s27, [#allocation6], %s2777_s8, %s2777_s8, %s2778_s9  }
  0x11   :  { %s2717_s11 = scalar_lea.vmem %s25_s29, 9216  ;;  %p2722_p6 = scmp.lt.s32.totalorder %s25_s29, %s25_s29 }
  0x12   :  { %p2718_p5 = scmp.ne.s32.totalorder %s25_s29, %s2717_s11  ;;  %p2723_p7 = scmp.lt.s32.totalorder %s2717_s11, %s2717_s11 }
  0x14   :  { %p2724_p8 = por %p2723_p7, %p2722_p6 }
  0x16   :  { %p2725_p9 = pnand %p2724_p8, %p2718_p5 }
  0x18   :  { %2728 = shalt.err (!%p2725_p9)
}
  0x19   :  { %30 = dma.hbm_to_vmem [thread:$0]  %s2915_s1, 9216, %s25_s29, [#allocation4], %s2777_s8, %s2777_s8, %s2778_s9  }
  0x1a   :  { %s2779_s14 = smov [#allocation7]  }
  0x1b   :  { %s48_s15 = sshll.u32 %s2779_s14, 4  ;;  %s49_s15 = int_to_ptr.vmem [resolvable:$true] %s48_s15 }
  0x1c   :  { %s2737_s16 = scalar_lea.vmem %s49_s15, 3072  ;;  %p2742_p11 = scmp.lt.s32.totalorder %s49_s15, %s49_s15 }
  0x1d   :  { %p2738_p10 = scmp.ne.s32.totalorder %s49_s15, %s2737_s16  ;;  %p2743_p12 = scmp.lt.s32.totalorder %s2737_s16, %s2737_s16 }
  0x1f   :  { %p2744_p13 = por %p2743_p12, %p2742_p11 }
  0x21   :  { %p2745_p0 = pnand %p2744_p13, %p2738_p10 }
  0x23   :  { %2748 = shalt.err (!%p2745_p0)
}
  0x24   :  { %s2780_s2 = smov 64   ;;  %s2781_s17 = smov 4  }
  0x25   :  { %54 = dma.hbm_to_vmem [thread:$0]  %s2917_s3, 3072, %s49_s15, [#allocation6], %s2780_s2, %s2780_s2, %s2781_s17  }
  0x26   :  { %s2782_s20 = smov [#allocation8]  }
  0x27   :  { %s60_s21 = sshll.u32 %s2782_s20, 4  ;;  %s61_s21 = int_to_ptr.vmem [resolvable:$true] %s60_s21 }
  0x28   :  { %s2757_s1 = scalar_lea.vmem %s61_s21, 3072  ;;  %p2762_p2 = scmp.lt.s32.totalorder %s61_s21, %s61_s21 }
  0x29   :  { %p2758_p1 = scmp.ne.s32.totalorder %s61_s21, %s2757_s1  ;;  %p2763_p3 = scmp.lt.s32.totalorder %s2757_s1, %s2757_s1 }
  0x2b   :  { %p2764_p4 = por %p2763_p3, %p2762_p2 }
  0x2d   :  { %p2765_p5 = pnand %p2764_p4, %p2758_p1 }
  0x2f   :  { %2768 = shalt.err (!%p2765_p5)
}
  0x30   :  { %66 = dma.hbm_to_vmem [thread:$0]  %s2918_s4, 3072, %s61_s21, [#allocation9], %s2780_s2, %s2780_s2, %s2781_s17  }
  0x31   :  { %2769 = dma.done.wait [#allocation4], 9216  }
  0x32   :  { %2770 = vsyncadd [#allocation4], 4294958080 }
  0x33   :  { %2771 = dma.done.wait [#allocation6], 12288  }
  0x34   :  { %2772 = vsyncadd [#allocation6], 4294955008 }
  0x35   :  { %2773 = dma.done.wait [#allocation9], 3072  }
  0x36   :  { %2774 = vsyncadd [#allocation9], 4294964224  ;;  %v2783_v1 = vmov 0   ;;  %v2434_v2 = vld [vmem:[#allocation3 + $0xac] ss:$12 sps:$4 sm:$0xff]   ;;  %v186_v26 = vlaneseq  ;;  %vm2786_vm0 = vmmov 0  }
  0x37   :  { %658 = vmatprep.mubr.bf16.mxu1 %v2783_v1  ;;  %v2436_v3 = vld [vmem:[#allocation3 + $0xa8] ss:$12 sps:$4 sm:$0xff]   ;;  %585 = vmatprep.subr.bf16.mxu0 %v2434_v2  ;;  %v2439_v5 = vld [vmem:[#allocation3 + $0x90] ss:$12 sps:$4 sm:$0xff]   ;;  %v2442_v7 = vld [vmem:[#allocation3 + $0x78] ss:$12 sps:$4 sm:$0xff]  }
  0x38   :  { %v2437_v4 = vld [vmem:[#allocation3 + $0x94] ss:$12 sps:$4 sm:$0xff]   ;;  %586 = vmatpush1.bf16.msra.mxu0 %v2436_v3  ;;  %v2440_v6 = vld [vmem:[#allocation3 + $0x7c] ss:$12 sps:$4 sm:$0xff]   ;;  %v2443_v8 = vld [vmem:[#allocation3 + $0x64] ss:$12 sps:$4 sm:$0xff]  }
  0x39   :  { %587 = vmatprep.subr.bf16.mxu0 %v2437_v4  ;;  %v2452_v9 = vld [vmem:[#allocation3 + $0x22c] ss:$12 sps:$4 sm:$0xff]   ;;  %v2454_v10 = vld [vmem:[#allocation3 + $0x228] ss:$12 sps:$4 sm:$0xff]   ;;  %v2460_v13 = vld [vmem:[#allocation3 + $0x210] ss:$12 sps:$4 sm:$0xff]  }
  0x3a   :  { %v2445_v11 = vld [vmem:[#allocation3 + $0x60] ss:$12 sps:$4 sm:$0xff]   ;;  %626 = vmatprep.subr.bf16.mxu1 %v2452_v9  ;;  %v2448_v15 = vld [vmem:[#allocation3 + $0x48] ss:$12 sps:$4 sm:$0xff]   ;;  %v2466_v18 = vld [vmem:[#allocation3 + $0x1f8] ss:$12 sps:$4 sm:$0xff]  }
  0x3b   :  { %627 = vmatpush1.bf16.msra.mxu1 %v2454_v10  ;;  %v2458_v12 = vld [vmem:[#allocation3 + $0x214] ss:$12 sps:$4 sm:$0xff]   ;;  %v2446_v14 = vld [vmem:[#allocation3 + $0x4c] ss:$12 sps:$4 sm:$0xff]   ;;  %v2464_v16 = vld [vmem:[#allocation3 + $0x1fc] ss:$12 sps:$4 sm:$0xff]  }
  0x3c   :  { %588 = vmatpush1.bf16.msra.mxu0 %v2439_v5  ;;  %628 = vmatprep.subr.bf16.mxu1 %v2458_v12  ;;  %v2449_v17 = vld [vmem:[#allocation3 + $0x34] ss:$12 sps:$4 sm:$0xff]   ;;  %v2470_v19 = vld [vmem:[#allocation3 + $0x1e4] ss:$12 sps:$4 sm:$0xff]   ;;  %v2455_v21 = vld [vmem:[#allocation3 + $0x1c] ss:$12 sps:$4 sm:$0xff]  }
  0x3d   :  { %589 = vmatprep.subr.bf16.mxu0 %v2440_v6  ;;  %v2451_v20 = vld [vmem:[#allocation3 + $0x30] ss:$12 sps:$4 sm:$0xff]   ;;  %v2472_v22 = vld [vmem:[#allocation3 + $0x1e0] ss:$12 sps:$4 sm:$0xff]   ;;  %v2784_v24 = vmov 1983009808  }
  0x3e   :  { %v2476_v23 = vld [vmem:[#allocation3 + $0x1cc] ss:$12 sps:$4 sm:$0xff]   ;;  %v184_v25 = vunpack.c.l.s4 %v2784_v24  ;;  %v2461_v28 = vld [vmem:[#allocation3 + $0x4] ss:$12 sps:$4 sm:$0xff]   ;;  %v2478_v29 = vld [vmem:[#allocation3 + $0x1c8] ss:$12 sps:$4 sm:$0xff]  }
  0x3f   :  { %629 = vmatpush1.bf16.msra.mxu1 %v2460_v13  ;;  %v2457_v27 = vld [vmem:[#allocation3 + $0x18] ss:$12 sps:$4 sm:$0xff]   ;;  %v2482_v30 = vld [vmem:[#allocation3 + $0x1b4] ss:$12 sps:$4 sm:$0xff]   ;;  %v187_v32 = vshrl.u32 %v186_v26, 7  ;;  %v2785_v13 = vmov 0.0  }
  0x40   :  { %590 = vmatpush1.bf16.msra.mxu0 %v2442_v7  ;;  %630 = vmatprep.subr.bf16.mxu1 %v2464_v16  ;;  %v185_v31 = vunpack.c.0.s8 %v184_v25  ;;  %v2463_v33 = vld [vmem:[#allocation3] ss:$12 sps:$4 sm:$0xff]   ;;  %v2484_v35 = vld [vmem:[#allocation3 + $0x1b0] ss:$12 sps:$4 sm:$0xff]   ;;  %v2469_v38 = vld [vmem:[#allocation3 + $0x168] ss:$12 sps:$4 sm:$0xff]  }
  0x41   :  { %591 = vmatprep.subr.bf16.mxu0 %v2443_v8  ;;  %v2467_v34 = vld [vmem:[#allocation3 + $0x16c] ss:$12 sps:$4 sm:$0xff]   ;;  %v2488_v36 = vld [vmem:[#allocation3 + $0x19c] ss:$12 sps:$4 sm:$0xff]   ;;  %v2473_v42 = vld [vmem:[#allocation3 + $0x154] ss:$12 sps:$4 sm:$0xff]  }
  0x42   :  { %v188_v37 = vsub.s32 %v185_v31, %v187_v32  ;;  %v84_v39 = vld [vmem:[%s2914_s0] sm:$0x3f]  ;;  %v2491_v56 = vld [vmem:[#allocation3 + $0x10c] ss:$12 sps:$4 sm:$0xff]   ;;  %v2493_v59 = vld [vmem:[#allocation3 + $0x108] ss:$12 sps:$4 sm:$0xff]  }
  0x43   :  { %631 = vmatpush1.bf16.msra.mxu1 %v2466_v18  ;;  %v2490_v40 = vld [vmem:[#allocation3 + $0x198] ss:$12 sps:$4 sm:$0xff]   ;;  %v2475_v44 = vld [vmem:[#allocation3 + $0x150] ss:$12 sps:$4 sm:$0xff]   ;;  %v182_v47 = vcombine.high %v84_v39, %v84_v39  ;;  %v2496_v48 = vld [vmem:[#allocation3 + $0x180] ss:$12 sps:$4 sm:$0xff]  }
  0x44   :  { %592 = vmatpush1.bf16.msra.mxu0 %v2445_v11  ;;  %632 = vmatprep.subr.bf16.mxu1 %v2470_v19  ;;  %v2846_v41 = vrot.slane %v84_v39, %v188_v37  ;;  %v2494_v43 = vld [vmem:[#allocation3 + $0x184] ss:$12 sps:$4 sm:$0xff]   ;;  %v2479_v46 = vld [vmem:[#allocation3 + $0x13c] ss:$12 sps:$4 sm:$0xff]   ;;  %v2487_v55 = vld [vmem:[#allocation3 + $0x120] ss:$12 sps:$4 sm:$0xff]  }
  0x45   :  { %593 = vmatprep.subr.bf16.mxu0 %v2446_v14  ;;  %v2500_v49 = vld [vmem:[#allocation3 + $0x170] ss:$12 sps:$4 sm:$0xff]   ;;  %v2481_v50 = vld [vmem:[#allocation3 + $0x138] ss:$12 sps:$4 sm:$0xff]   ;;  %v2853_v52 = vrot.slane %v182_v47, %v188_v37  ;;  %v2511_v58 = vld [vmem:[#allocation3 + $0x140] ss:$12 sps:$4 sm:$0xff]  }
  0x46   :  { %v2850_v45 = vcombine.high %v2846_v41, %v2846_v41  ;;  %v2485_v51 = vld [vmem:[#allocation3 + $0x124] ss:$12 sps:$4 sm:$0xff]   ;;  %v2497_v60 = vld [vmem:[#allocation3 + $0xf4] ss:$12 sps:$4 sm:$0xff]   ;;  %v2503_v0 = vld [vmem:[#allocation3 + $0xdc] ss:$12 sps:$4 sm:$0xff]  }
  0x47   :  { %633 = vmatpush1.bf16.msra.mxu1 %v2472_v22  ;;  %v2502_v53 = vld [vmem:[#allocation3 + $0xb0] ss:$12 sps:$4 sm:$0xff]   ;;  %v2506_v54 = vld [vmem:[#allocation3 + $0x158] ss:$12 sps:$4 sm:$0xff]   ;;  %v2512_v61 = vld [vmem:[#allocation3 + $0x80] ss:$12 sps:$4 sm:$0xff]  }
  0x48   :  { %594 = vmatpush1.bf16.msra.mxu0 %v2448_v15  ;;  %634 = vmatprep.subr.bf16.mxu1 %v2476_v23  ;;  %v2507_v57 = vld [vmem:[#allocation3 + $0x98] ss:$12 sps:$4 sm:$0xff]   ;;  %v2514_v62 = vld [vmem:[#allocation3 + $0x128] ss:$12 sps:$4 sm:$0xff]   ;;  %v2499_v63 = vld [vmem:[#allocation3 + $0xf0] ss:$12 sps:$4 sm:$0xff]  }
  0x49   :  { %595 = vmatprep.subr.bf16.mxu0 %v2449_v17  ;;  %617 = vmatprep.mubr.bf16.mxu0 %v2850_v45  ;;  %v2515_v2 = vld [vmem:[#allocation3 + $0x68] ss:$12 sps:$4 sm:$0xff]   ;;  %v2517_v3 = vld [vmem:[#allocation3 + $0x110] ss:$12 sps:$4 sm:$0xff]   ;;  %v2505_v4 = vld [vmem:[#allocation3 + $0xd8] ss:$12 sps:$4 sm:$0xff]  }
  0x4a   :  { %v2508_v5 = vld [vmem:[#allocation3 + $0xc4] ss:$12 sps:$4 sm:$0xff]   ;;  %v2510_v8 = vld [vmem:[#allocation3 + $0xc0] ss:$12 sps:$4 sm:$0xff]   ;;  %v2526_v14 = vld [vmem:[#allocation3 + $0xc8] ss:$12 sps:$4 sm:$0xff]  }
  0x4b   :  { %635 = vmatpush1.bf16.msra.mxu1 %v2478_v29  ;;  %v2518_v6 = vld [vmem:[#allocation3 + $0x50] ss:$12 sps:$4 sm:$0xff]   ;;  %v2520_v7 = vld [vmem:[#allocation3 + $0xf8] ss:$12 sps:$4 sm:$0xff]   ;;  %v2523_v10 = vld [vmem:[#allocation3 + $0xe0] ss:$12 sps:$4 sm:$0xff]  }
  0x4c   :  { %596 = vmatpush1.bf16.msra.mxu0 %v2451_v20  ;;  %636 = vmatprep.subr.bf16.mxu1 %v2482_v30  ;;  %v2521_v9 = vld [vmem:[#allocation3 + $0x38] ss:$12 sps:$4 sm:$0xff]   ;;  %v2513_v11 = vld [vmem:[#allocation3 + $0x230] ss:$12 sps:$4 sm:$0xff]   ;;  %v2524_v12 = vld [vmem:[#allocation3 + $0x20] ss:$12 sps:$4 sm:$0xff]  }
  0x4d   :  { %597 = vmatprep.subr.bf16.mxu0 %v2455_v21  ;;  %v2516_v15 = vld [vmem:[#allocation3 + $0x218] ss:$12 sps:$4 sm:$0xff]   ;;  %v2527_v16 = vld [vmem:[#allocation3 + $0x8] ss:$12 sps:$4 sm:$0xff]   ;;  %v2519_v18 = vld [vmem:[#allocation3 + $0x200] ss:$12 sps:$4 sm:$0xff]  }
  0x4e   :  { %v2533_v17 = vld [vmem:[#allocation5 + $0xac] ss:$12 sps:$4 sm:$0xff]   ;;  %v2531_v19 = vld [vmem:[#allocation5 + $0xa8] ss:$12 sps:$4 sm:$0xff]   ;;  %v2534_v22 = vld [vmem:[#allocation5 + $0x90] ss:$12 sps:$4 sm:$0xff]  }
  0x4f   :  { %637 = vmatpush1.bf16.msra.mxu1 %v2484_v35  ;;  %v2536_v20 = vld [vmem:[#allocation5 + $0x94] ss:$12 sps:$4 sm:$0xff]   ;;  %v2539_v23 = vld [vmem:[#allocation5 + $0x7c] ss:$12 sps:$4 sm:$0xff]   ;;  %v2537_v25 = vld [vmem:[#allocation5 + $0x78] ss:$12 sps:$4 sm:$0xff]  }
  0x50   :  { %598 = vmatpush1.bf16.msra.mxu0 %v2457_v27  ;;  %638 = vmatprep.subr.bf16.mxu1 %v2488_v36  ;;  %v2522_v21 = vld [vmem:[#allocation3 + $0x1e8] ss:$12 sps:$4 sm:$0xff]   ;;  %v2525_v24 = vld [vmem:[#allocation3 + $0x1d0] ss:$12 sps:$4 sm:$0xff]   ;;  %v2528_v27 = vld [vmem:[#allocation3 + $0x1b8] ss:$12 sps:$4 sm:$0xff]  }
  0x51   :  { %599 = vmatprep.subr.bf16.mxu0 %v2461_v28  ;;  %v2542_v26 = vld [vmem:[#allocation5 + $0x64] ss:$12 sps:$4 sm:$0xff]   ;;  %v2540_v28 = vld [vmem:[#allocation5 + $0x60] ss:$12 sps:$4 sm:$0xff]   ;;  %v2543_v31 = vld [vmem:[#allocation5 + $0x48] ss:$12 sps:$4 sm:$0xff]  }
  0x52   :  { %v2545_v29 = vld [vmem:[#allocation5 + $0x4c] ss:$12 sps:$4 sm:$0xff]   ;;  %v2548_v32 = vld [vmem:[#allocation5 + $0x34] ss:$12 sps:$4 sm:$0xff]   ;;  %v2551_v35 = vld [vmem:[#allocation5 + $0x1c] ss:$12 sps:$4 sm:$0xff]  }
  0x53   :  { %639 = vmatpush1.bf16.msra.mxu1 %v2490_v40  ;;  %v2529_v30 = vld [vmem:[#allocation3 + $0x1a0] ss:$12 sps:$4 sm:$0xff]   ;;  %v2549_v36 = vld [vmem:[#allocation5 + $0x18] ss:$12 sps:$4 sm:$0xff]   ;;  %v2555_v39 = vld [vmem:[#allocation5 + $0x168] ss:$12 sps:$4 sm:$0xff]  }
  0x54   :  { %600 = vmatpush1.bf16.msra.mxu0 %v2463_v33  ;;  %640 = vmatprep.subr.bf16.mxu1 %v2494_v43  ;;  %v2530_v33 = vld [vmem:[#allocation3 + $0x188] ss:$12 sps:$4 sm:$0xff]   ;;  %v2552_v37 = vld [vmem:[#allocation5] ss:$12 sps:$4 sm:$0xff]   ;;  %v2558_v43 = vld [vmem:[#allocation5 + $0x150] ss:$12 sps:$4 sm:$0xff]  }
  0x55   :  { %601 = vmatprep.subr.bf16.mxu0 %v2467_v34  ;;  %v2546_v34 = vld [vmem:[#allocation5 + $0x30] ss:$12 sps:$4 sm:$0xff]   ;;  %v2557_v40 = vld [vmem:[#allocation5 + $0x16c] ss:$12 sps:$4 sm:$0xff]   ;;  %vm1996_vm8 = vcmask 1043456   ;;  %vm2008_vm9 = vcmask 3072  }
  0x56   :  { %v2566_v47 = vld [vmem:[#allocation5 + $0x124] ss:$12 sps:$4 sm:$0xff]  }
  0x57   :  { %641 = vmatpush1.bf16.msra.mxu1 %v2496_v48  ;;  %v2564_v48 = vld [vmem:[#allocation5 + $0x120] ss:$12 sps:$4 sm:$0xff]  }
  0x58   :  { %602 = vmatpush2.bf16.msra.mxu0 %v2469_v38  ;;  %2218 = vmatprep.subr.bf16.mxu1 %v2500_v49  ;;  %v2554_v38 = vld [vmem:[#allocation5 + $0x4] ss:$12 sps:$4 sm:$0xff]   ;;  %v2567_v49 = vld [vmem:[#allocation5 + $0x108] ss:$12 sps:$4 sm:$0xff]  }
  0x59   :  { %603 = vmatprep.subr.bf16.mxu0 %v2473_v42  ;;  %v2560_v42 = vld [vmem:[#allocation5 + $0x154] ss:$12 sps:$4 sm:$0xff]  }
  0x5a   :  { %659 = vmatmul.mubr.bf16.vlgmr.msra.gmra.mxu1 %v2853_v52 }
  0x5b   :  { %2219 = vmatpush3.bf16.msra.mxu1 %v2502_v53  ;;  %699 = vmatprep.mubr.bf16.mxu1 %v2850_v45  ;;  %v2575_v53 = vld [vmem:[#allocation5 + $0xdc] ss:$12 sps:$4 sm:$0xff]  }
  0x5c   :  { %604 = vmatpush2.bf16.msra.mxu0 %v2475_v44  ;;  %2220 = vmatprep.subr.bf16.mxu1 %v2506_v54  ;;  %v2563_v44 = vld [vmem:[#allocation5 + $0x13c] ss:$12 sps:$4 sm:$0xff]   ;;  %v2573_v54 = vld [vmem:[#allocation5 + $0xd8] ss:$12 sps:$4 sm:$0xff]  }
  0x5d   :  { %605 = vmatprep.subr.bf16.mxu0 %v2479_v46  ;;  %v2561_v46 = vld [vmem:[#allocation5 + $0x138] ss:$12 sps:$4 sm:$0xff]  }
  0x5f   :  { %2221 = vmatpush3.bf16.msra.mxu1 %v2507_v57  ;;  %v2581_v57 = vld [vmem:[#allocation5 + $0x22c] ss:$12 sps:$4 sm:$0xff]  }
  0x60   :  { %606 = vmatpush2.bf16.msra.mxu0 %v2481_v50  ;;  %2222 = vmatprep.subr.bf16.mxu1 %v2511_v58  ;;  %v2572_v50 = vld [vmem:[#allocation5 + $0xf4] ss:$12 sps:$4 sm:$0xff]  }
  0x61   :  { %607 = vmatprep.subr.bf16.mxu0 %v2485_v51  ;;  %v2570_v51 = vld [vmem:[#allocation5 + $0xf0] ss:$12 sps:$4 sm:$0xff]   ;;  %v2579_v58 = vld [vmem:[#allocation5 + $0x228] ss:$12 sps:$4 sm:$0xff]  }
  0x63   :  { %2223 = vmatpush3.bf16.msra.mxu1 %v2512_v61  ;;  %v2588_v61 = vld [vmem:[#allocation5 + $0x1fc] ss:$12 sps:$4 sm:$0xff]  }
  0x64   :  { %608 = vmatpush2.bf16.msra.mxu0 %v2487_v55  ;;  %2224 = vmatprep.subr.bf16.mxu1 %v2514_v62  ;;  %v2578_v55 = vld [vmem:[#allocation5 + $0xc4] ss:$12 sps:$4 sm:$0xff]  }
  0x65   :  { %609 = vmatprep.subr.bf16.mxu0 %v2491_v56  ;;  %v2576_v56 = vld [vmem:[#allocation5 + $0xc0] ss:$12 sps:$4 sm:$0xff]   ;;  %v2586_v62 = vld [vmem:[#allocation5 + $0x1f8] ss:$12 sps:$4 sm:$0xff]  }
  0x67   :  { %2225 = vmatpush3.bf16.msra.mxu1 %v2515_v2  ;;  %v2596_v2 = vld [vmem:[#allocation5 + $0x1cc] ss:$12 sps:$4 sm:$0xff]  }
  0x68   :  { %610 = vmatpush2.bf16.msra.mxu0 %v2493_v59  ;;  %2226 = vmatprep.subr.bf16.mxu1 %v2517_v3  ;;  %v2584_v59 = vld [vmem:[#allocation5 + $0x214] ss:$12 sps:$4 sm:$0xff]  }
  0x69   :  { %611 = vmatprep.subr.bf16.mxu0 %v2497_v60  ;;  %v2582_v60 = vld [vmem:[#allocation5 + $0x210] ss:$12 sps:$4 sm:$0xff]   ;;  %v2594_v3 = vld [vmem:[#allocation5 + $0x1c8] ss:$12 sps:$4 sm:$0xff]  }
  0x6b   :  { %2227 = vmatpush3.bf16.msra.mxu1 %v2518_v6  ;;  %v2604_v6 = vld [vmem:[#allocation5 + $0x19c] ss:$12 sps:$4 sm:$0xff]  }
  0x6c   :  { %612 = vmatpush2.bf16.msra.mxu0 %v2499_v63  ;;  %2228 = vmatprep.subr.bf16.mxu1 %v2520_v7  ;;  %v2592_v63 = vld [vmem:[#allocation5 + $0x1e4] ss:$12 sps:$4 sm:$0xff]  }
  0x6d   :  { %613 = vmatprep.subr.bf16.mxu0 %v2503_v0  ;;  %v2590_v0 = vld [vmem:[#allocation5 + $0x1e0] ss:$12 sps:$4 sm:$0xff]   ;;  %v2602_v7 = vld [vmem:[#allocation5 + $0x198] ss:$12 sps:$4 sm:$0xff]  }
  0x6f   :  { %2229 = vmatpush3.bf16.msra.mxu1 %v2521_v9  ;;  %v2606_v9 = vld [vmem:[#allocation5 + $0x180] ss:$12 sps:$4 sm:$0xff]  }
  0x70   :  { %614 = vmatpush2.bf16.msra.mxu0 %v2505_v4  ;;  %2230 = vmatprep.subr.bf16.mxu1 %v2523_v10  ;;  %v2600_v4 = vld [vmem:[#allocation5 + $0x1b4] ss:$12 sps:$4 sm:$0xff]   ;;  %v2610_v10 = vld [vmem:[#allocation5 + $0x170] ss:$12 sps:$4 sm:$0xff]  }
  0x71   :  { %615 = vmatprep.subr.bf16.mxu0 %v2508_v5  ;;  %v2598_v5 = vld [vmem:[#allocation5 + $0x1b0] ss:$12 sps:$4 sm:$0xff]  }
  0x73   :  { %2231 = vmatpush3.bf16.msra.mxu1 %v2524_v12 }
  0x74   :  { %616 = vmatpush2.bf16.msra.mxu0 %v2510_v8  ;;  %2232 = vmatprep.subr.bf16.mxu1 %v2526_v14  ;;  %v2608_v8 = vld [vmem:[#allocation5 + $0x184] ss:$12 sps:$4 sm:$0xff]  }
  0x75   :  { %2342 = vmatprep.subr.bf16.mxu0 %v2785_v13 }
  0x77   :  { %618 = vmatmul.mubr.bf16.vlgmr.msra.gmra.mxu0 %v2846_v41  ;;  %2233 = vmatpush3.bf16.msra.mxu1 %v2527_v16 }
  0x78   :  { %2343 = vmatpush3.bf16.msra.mxu0 %v2513_v11  ;;  %2358 = vmatprep.mubr.msk.bf16.mxu0 %vm2786_vm0, %v2785_v13 }
  0x79   :  { %2344 = vmatprep.subr.bf16.mxu0 %v2785_v13  ;;  %1251 = vmatprep.subr.bf16.mxu1 %v2533_v17 }
  0x7a   :  { %700 = vmatmul.mubr.bf16.vlgmr.msra.gmra.mxu1 %v2846_v41 }
  0x7b   :  { %1252 = vmatpush1.bf16.msra.mxu1 %v2531_v19 }
  0x7c   :  { %2345 = vmatpush3.bf16.msra.mxu0 %v2516_v15  ;;  %1253 = vmatprep.subr.bf16.mxu1 %v2536_v20 }
  0x7d   :  { %2346 = vmatprep.subr.bf16.mxu0 %v2785_v13 }
  0x7f   :  { %1254 = vmatpush1.bf16.msra.mxu1 %v2534_v22 }
  0x80   :  { %2347 = vmatpush3.bf16.msra.mxu0 %v2519_v18  ;;  %1255 = vmatprep.subr.bf16.mxu1 %v2539_v23 }
  0x81   :  { %2348 = vmatprep.subr.bf16.mxu0 %v2785_v13 }
  0x83   :  { %1256 = vmatpush1.bf16.msra.mxu1 %v2537_v25 }
  0x84   :  { %2349 = vmatpush3.bf16.msra.mxu0 %v2522_v21  ;;  %1257 = vmatprep.subr.bf16.mxu1 %v2542_v26 }
  0x85   :  { %2350 = vmatprep.subr.bf16.mxu0 %v2785_v13 }
  0x87   :  { %1258 = vmatpush1.bf16.msra.mxu1 %v2540_v28 }
  0x88   :  { %2351 = vmatpush3.bf16.msra.mxu0 %v2525_v24  ;;  %1259 = vmatprep.subr.bf16.mxu1 %v2545_v29 }
  0x89   :  { %2352 = vmatprep.subr.bf16.mxu0 %v2785_v13 }
  0x8b   :  { %1260 = vmatpush1.bf16.msra.mxu1 %v2543_v31 }
  0x8c   :  { %2353 = vmatpush3.bf16.msra.mxu0 %v2528_v27  ;;  %1261 = vmatprep.subr.bf16.mxu1 %v2548_v32 }
  0x8d   :  { %2354 = vmatprep.subr.bf16.mxu0 %v2785_v13 }
  0x8f   :  { %1262 = vmatpush1.bf16.msra.mxu1 %v2546_v34 }
  0x90   :  { %2355 = vmatpush3.bf16.msra.mxu0 %v2529_v30  ;;  %1263 = vmatprep.subr.bf16.mxu1 %v2551_v35 }
  0x91   :  { %2356 = vmatprep.subr.bf16.mxu0 %v2785_v13 }
  0x93   :  { %1264 = vmatpush1.bf16.msra.mxu1 %v2549_v36 }
  0x94   :  { %2357 = vmatpush3.bf16.msra.mxu0 %v2530_v33  ;;  %1265 = vmatprep.subr.bf16.mxu1 %v2554_v38 }
  0x95   :  { %1292 = vmatprep.subr.bf16.mxu0 %v2581_v57  ;;  %v2609_v57 = vld [vmem:[#allocation5 + $0x1a0] ss:$12 sps:$4 sm:$0xff]  }
  0x97   :  { %2359 = vmatmul.mubr.bf16.vlgmr.msra.gmra.mxu0 %v2853_v52  ;;  %1266 = vmatpush1.bf16.msra.mxu1 %v2552_v37 }
  0x98   :  { %1324 = vmatprep.mubr.bf16.mxu0 %v2783_v1  ;;  %1267 = vmatprep.subr.bf16.mxu1 %v2557_v40  ;;  %v2569_v1 = vld [vmem:[#allocation5 + $0x10c] ss:$12 sps:$4 sm:$0xff]  }
  0x99   :  { %1293 = vmatpush1.bf16.msra.mxu0 %v2579_v58 }
  0x9a   :  { %1294 = vmatprep.subr.bf16.mxu0 %v2584_v59 }
  0x9b   :  { %1268 = vmatpush2.bf16.msra.mxu1 %v2555_v39  ;;  %v2585_v39 = vld [vmem:[#allocation5 + $0x230] ss:$12 sps:$4 sm:$0xff]  }
  0x9c   :  { %1269 = vmatprep.subr.bf16.mxu1 %v2560_v42 }
  0x9d   :  { %1295 = vmatpush1.bf16.msra.mxu0 %v2582_v60  ;;  %v2611_v60 = vld [vmem:[#allocation5 + $0x188] ss:$12 sps:$4 sm:$0xff]  }
  0x9e   :  { %1296 = vmatprep.subr.bf16.mxu0 %v2588_v61 }
  0x9f   :  { %1270 = vmatpush2.bf16.msra.mxu1 %v2558_v43 }
  0xa0   :  { %1271 = vmatprep.subr.bf16.mxu1 %v2563_v44  ;;  %v2589_v44 = vld [vmem:[#allocation5 + $0x218] ss:$12 sps:$4 sm:$0xff]  }
  0xa1   :  { %1297 = vmatpush1.bf16.msra.mxu0 %v2586_v62  ;;  %v2612_v62 = vld [vmem:[#allocation5 + $0xb0] ss:$12 sps:$4 sm:$0xff]  }
  0xa2   :  { %1298 = vmatprep.subr.bf16.mxu0 %v2592_v63 }
  0xa3   :  { %1272 = vmatpush2.bf16.msra.mxu1 %v2561_v46 }
  0xa4   :  { %1273 = vmatprep.subr.bf16.mxu1 %v2566_v47 }
  0xa5   :  { %1299 = vmatpush1.bf16.msra.mxu0 %v2590_v0  ;;  %v2613_v0 = vld [vmem:[#allocation5 + $0x158] ss:$12 sps:$4 sm:$0xff]  }
  0xa6   :  { %1300 = vmatprep.subr.bf16.mxu0 %v2596_v2  ;;  %v2614_v2 = vld [vmem:[#allocation5 + $0x98] ss:$12 sps:$4 sm:$0xff]  }
  0xa7   :  { %1274 = vmatpush2.bf16.msra.mxu1 %v2564_v48 }
  0xa8   :  { %1275 = vmatprep.subr.bf16.mxu1 %v2569_v1 }
  0xa9   :  { %1301 = vmatpush1.bf16.msra.mxu0 %v2594_v3  ;;  %v2615_v3 = vld [vmem:[#allocation5 + $0x140] ss:$12 sps:$4 sm:$0xff]  }
  0xaa   :  { %1302 = vmatprep.subr.bf16.mxu0 %v2600_v4  ;;  %v2616_v4 = vld [vmem:[#allocation5 + $0x80] ss:$12 sps:$4 sm:$0xff]  }
  0xab   :  { %1276 = vmatpush2.bf16.msra.mxu1 %v2567_v49  ;;  %v2593_v49 = vld [vmem:[#allocation5 + $0x200] ss:$12 sps:$4 sm:$0xff]  }
  0xac   :  { %1277 = vmatprep.subr.bf16.mxu1 %v2572_v50 }
  0xad   :  { %1303 = vmatpush1.bf16.msra.mxu0 %v2598_v5  ;;  %v2617_v5 = vld [vmem:[#allocation5 + $0x128] ss:$12 sps:$4 sm:$0xff]  }
  0xae   :  { %1304 = vmatprep.subr.bf16.mxu0 %v2604_v6  ;;  %v2618_v6 = vld [vmem:[#allocation5 + $0x68] ss:$12 sps:$4 sm:$0xff]  }
  0xaf   :  { %1278 = vmatpush2.bf16.msra.mxu1 %v2570_v51 }
  0xb0   :  { %1279 = vmatprep.subr.bf16.mxu1 %v2575_v53  ;;  %v2597_v53 = vld [vmem:[#allocation5 + $0x1e8] ss:$12 sps:$4 sm:$0xff]  }
  0xb1   :  { %1305 = vmatpush1.bf16.msra.mxu0 %v2602_v7  ;;  %v2619_v7 = vld [vmem:[#allocation5 + $0x110] ss:$12 sps:$4 sm:$0xff]  }
  0xb2   :  { %1306 = vmatprep.subr.bf16.mxu0 %v2608_v8  ;;  %v2620_v8 = vld [vmem:[#allocation5 + $0x50] ss:$12 sps:$4 sm:$0xff]  }
  0xb3   :  { %1280 = vmatpush2.bf16.msra.mxu1 %v2573_v54  ;;  %v2601_v54 = vld [vmem:[#allocation5 + $0x1d0] ss:$12 sps:$4 sm:$0xff]  }
  0xb4   :  { %1281 = vmatprep.subr.bf16.mxu1 %v2578_v55  ;;  %v2605_v55 = vld [vmem:[#allocation5 + $0x1b8] ss:$12 sps:$4 sm:$0xff]  }
  0xb5   :  { %1307 = vmatpush1.bf16.msra.mxu0 %v2606_v9  ;;  %v2621_v9 = vld [vmem:[#allocation5 + $0xf8] ss:$12 sps:$4 sm:$0xff]  }
  0xb6   :  { %2249 = vmatprep.subr.bf16.mxu0 %v2610_v10  ;;  %v2622_v10 = vld [vmem:[#allocation5 + $0x38] ss:$12 sps:$4 sm:$0xff]  }
  0xb7   :  { %1282 = vmatpush2.bf16.msra.mxu1 %v2576_v56 }
  0xb8   :  { %2362 = vmatprep.subr.bf16.mxu1 %v2785_v13 }
 0x11a   :  { %v660_v11 = vpop.f32.mrf.mxu1 }
 0x11c   :  { %v662_v12 = vpop.f32.mrf.mxu1 }
 0x11e   :  { %v664_v14 = vpop.f32.mrf.mxu1 }
 0x11f   :  { %v2625_v14 = vld [vmem:[#allocation5 + $0xc8] ss:$12 sps:$4 sm:$0xff]  }
 0x120   :  { %v665_v15 = vpop.f32.mrf.mxu1 }
 0x121   :  { %v2626_v15 = vld [vmem:[#allocation5 + $0x8] ss:$12 sps:$4 sm:$0xff]  }
 0x137   :  { %v619_v16 = vpop.f32.mrf.mxu0 }
 0x138   :  { %v661_v17 = vadd.f32 %v660_v11, %v619_v16  ;;  %v2623_v11 = vld [vmem:[#allocation5 + $0xe0] ss:$12 sps:$4 sm:$0xff]   ;;  %v2627_v16 = vld [vmem:[#allocation8 + $0x78] sm:$0xff]  }
 0x139   :  { %v621_v18 = vpop.f32.mrf.mxu0 }
 0x13a   :  { %v750_v19 = vmin.f32 %v661_v17, 0.0  ;;  %v663_v20 = vadd.f32 %v662_v12, %v621_v18  ;;  %v2234_v26 = vpop.f32.mrf.mxu1  ;;  %vm747_vm1 = vcmp.gt.f32.partialorder %v661_v17, 0.0  ;;  %v2624_v12 = vld [vmem:[#allocation5 + $0x20] ss:$12 sps:$4 sm:$0xff]   ;;  %v2629_v18 = vld [vmem:[#allocation8 + $0x70] sm:$0xff]  }
 0x13b   :  { %v623_v21 = vpop.f32.mrf.mxu0 }
 0x13c   :  { %v753_v22 = vmul.f32 1.442695, %v750_v19  ;;  %v751_v23 = vmin.f32 %v663_v20, 0.0  ;;  %v2235_v27 = vpop.f32.mrf.mxu1  ;;  %vm748_vm2 = vcmp.gt.f32.partialorder %v663_v20, 0.0  ;;  %v2630_v19 = vld [vmem:[#allocation8 + $0x30] sm:$0xff]   ;;  %v2632_v21 = vld [vmem:[#allocation8 + $0x28] sm:$0xff]  }
 0x13d   :  { %v624_v24 = vpop.f32.mrf.mxu0  ;;  %v2236_v42 = vadd.f32 %v2235_v27, %v2234_v26  ;;  %v2636_v26 = vld [vmem:[#allocation8 + $0x18] sm:$0xff]   ;;  %v2637_v27 = vld [vmem:[#allocation8 + $0x50] sm:$0xff]  }
 0x13e   :  { %2675 = vpow2.f32 %v753_v22  ;;  %v755_v25 = vmul.f32 1.442695, %v751_v23  ;;  %v2237_v28 = vpop.f32.mrf.mxu1  ;;  %v2633_v22 = vld [vmem:[#allocation8 + $0x60] sm:$0xff]   ;;  %v2635_v24 = vld [vmem:[#allocation8 + $0x58] sm:$0xff]  }
 0x13f   :  { %v2634_v23 = vld [vmem:[#allocation8 + $0x20] sm:$0xff]   ;;  %v2644_v28 = vld [vmem:[#allocation8 + $0xb0] sm:$0xff]  }
 0x140   :  { %2677 = vpow2.f32 %v755_v25  ;;  %v2238_v29 = vpop.f32.mrf.mxu1  ;;  %v2642_v25 = vld [vmem:[#allocation8 + $0xb8] sm:$0xff]  }
 0x141   :  { %v2639_v29 = vld [vmem:[#allocation8 + $0x48] sm:$0xff]  }
 0x14b   :  { %v2676_v30 = vpop.eup %2675 }
 0x14c   :  { %v2089_v31 = vadd.f32 -1.0, %v2676_v30  ;;  %v2640_v30 = vld [vmem:[#allocation8 + $0x8] sm:$0xff]  }
 0x14d   :  { %v2678_v32 = vpop.eup %2677 }
 0x14e   :  { %v762_v33 = vmul.f32 0.2, %v2089_v31  ;;  %v2090_v34 = vadd.f32 -1.0, %v2678_v32  ;;  %v2641_v31 = vld [vmem:[#allocation8 + $0x40] sm:$0xff]  }
 0x14f   :  { %v2643_v32 = vld [vmem:[#allocation8] sm:$0xff]  }
 0x150   :  { %v763_v35 = vmul.f32 0.2, %v2090_v34  ;;  %v765_v36 = vsel %vm747_vm1, %v661_v17, %v762_v33  ;;  %v2628_v17 = vld [vmem:[#allocation8 + $0x38] sm:$0xff]  }
 0x151   :  { %v2872_v40 = vpack.c.bf16 %v765_v36, %v765_v36  ;;  %v2645_v33 = vld [vmem:[#allocation7 + $0x78] sm:$0xff]   ;;  %v2648_v36 = vld [vmem:[#allocation7 + $0x70] sm:$0xff]  }
 0x152   :  { %v766_v37 = vsel %vm748_vm2, %v663_v20, %v763_v35  ;;  %v2631_v20 = vld [vmem:[#allocation8 + $0x68] sm:$0xff]   ;;  %v2646_v34 = vld [vmem:[#allocation7 + $0x38] sm:$0xff]  }
 0x153   :  { %v769_v38 = vpack.c.bf16 %v766_v37, %v766_v37  ;;  %v2647_v35 = vld [vmem:[#allocation8 + $0xa8] sm:$0xff]   ;;  %v2649_v37 = vld [vmem:[#allocation7 + $0x30] sm:$0xff]  }
 0x155   :  { %1283 = vmatprep.mubr.bf16.mxu1 %v769_v38 }
 0x156   :  { %1284 = vmatmul.mubr.bf16.vlgmr.msra.gmra.mxu1 %v2872_v40 }
 0x157   :  { %2363 = vmatpush3.bf16.msra.mxu1 %v2585_v39  ;;  %v741_v43 = vpop.f32.mrf.mxu0  ;;  %2378 = vmatprep.mubr.msk.bf16.mxu1 %vm2786_vm0, %v2785_v13  ;;  %v2651_v39 = vld [vmem:[#allocation7 + $0x68] sm:$0xff]  }
 0x158   :  { %v742_v46 = vadd.f32 %v2236_v42, %v741_v43  ;;  %2364 = vmatprep.subr.bf16.mxu1 %v2785_v13  ;;  %v2653_v42 = vld [vmem:[#allocation8 + $0x98] sm:$0xff]   ;;  %v2654_v43 = vld [vmem:[#allocation7 + $0x60] sm:$0xff]  }
 0x159   :  { %v2360_v47 = vpop.f32.mrf.mxu0 }
 0x15a   :  { %v752_v48 = vmin.f32 %v742_v46, 0.0  ;;  %vm749_vm3 = vcmp.gt.f32.partialorder %v742_v46, 0.0  ;;  %v2658_v47 = vld [vmem:[#allocation7 + $0x18] sm:$0xff]  }
 0x15b   :  { %2365 = vmatpush3.bf16.msra.mxu1 %v2589_v44  ;;  %v744_v1 = vpop.f32.mrf.mxu0  ;;  %v2656_v44 = vld [vmem:[#allocation8 + $0x90] sm:$0xff]  }
 0x15c   :  { %v757_v50 = vmul.f32 1.442695, %v752_v48  ;;  %2366 = vmatprep.subr.bf16.mxu1 %v2785_v13  ;;  %v2659_v48 = vld [vmem:[#allocation8 + $0x88] sm:$0xff]   ;;  %v2660_v1 = vld [vmem:[#allocation7 + $0x50] sm:$0xff]  }
 0x15d   :  { %v2361_v51 = vpop.f32.mrf.mxu0 }
 0x15e   :  { %2679 = vpow2.f32 %v757_v50  ;;  %v2662_v50 = vld [vmem:[#allocation8 + $0x80] sm:$0xff]   ;;  %v2663_v51 = vld [vmem:[#allocation7 + $0x48] sm:$0xff]  }
 0x15f   :  { %2367 = vmatpush3.bf16.msra.mxu1 %v2593_v49  ;;  %v2661_v49 = vld [vmem:[#allocation7 + $0x10] sm:$0xff]  }
 0x160   :  { %2368 = vmatprep.subr.bf16.mxu1 %v2785_v13 }
 0x163   :  { %2369 = vmatpush3.bf16.msra.mxu1 %v2597_v53  ;;  %v2664_v53 = vld [vmem:[#allocation7 + $0x8] sm:$0xff]  }
 0x164   :  { %2370 = vmatprep.subr.bf16.mxu1 %v2785_v13 }
 0x167   :  { %2371 = vmatpush3.bf16.msra.mxu1 %v2601_v54  ;;  %v2665_v54 = vld [vmem:[#allocation7 + $0x40] sm:$0xff]  }
 0x168   :  { %2372 = vmatprep.subr.bf16.mxu1 %v2785_v13 }
 0x16b   :  { %v2680_v56 = vpop.eup %2679  ;;  %2373 = vmatpush3.bf16.msra.mxu1 %v2605_v55  ;;  %v2666_v55 = vld [vmem:[#allocation7] sm:$0xff]  }
 0x16c   :  { %v2091_v58 = vadd.f32 -1.0, %v2680_v56  ;;  %2374 = vmatprep.subr.bf16.mxu1 %v2785_v13  ;;  %v2667_v56 = vld [vmem:[#allocation7 + $0xb8] sm:$0xff]  }
 0x16e   :  { %v764_v59 = vmul.f32 0.2, %v2091_v58  ;;  %v2669_v58 = vld [vmem:[#allocation7 + $0xa8] sm:$0xff]  }
 0x16f   :  { %2375 = vmatpush3.bf16.msra.mxu1 %v2609_v57  ;;  %v2668_v57 = vld [vmem:[#allocation7 + $0xb0] sm:$0xff]  }
 0x170   :  { %v767_v61 = vsel %vm749_vm3, %v742_v46, %v764_v59  ;;  %2376 = vmatprep.subr.bf16.mxu1 %v2785_v13  ;;  %v2657_v46 = vld [vmem:[#allocation7 + $0x58] sm:$0xff]   ;;  %v2670_v59 = vld [vmem:[#allocation7 + $0xa0] sm:$0xff]  }
 0x171   :  { %v770_v63 = vpack.c.bf16 %v767_v61, %v767_v61  ;;  %v2673_v61 = vld [vmem:[#allocation7 + $0x88] sm:$0xff]  }
 0x173   :  { %2377 = vmatpush3.bf16.msra.mxu1 %v2611_v60  ;;  %1325 = vmatmul.mubr.bf16.vlgmr.msra.gmra.mxu0 %v770_v63  ;;  %v2672_v60 = vld [vmem:[#allocation7 + $0x90] sm:$0xff]  }
 0x174   :  { %2250 = vmatpush3.bf16.msra.mxu0 %v2612_v62  ;;  %1365 = vmatprep.mubr.bf16.mxu0 %v769_v38  ;;  %v2650_v38 = vld [vmem:[#allocation8 + $0xa0] sm:$0xff]  }
 0x175   :  { %2251 = vmatprep.subr.bf16.mxu0 %v2613_v0  ;;  %2382 = vmatprep.subr.bf16.mxu1 %v2785_v13  ;;  %v2674_v62 = vld [vmem:[#allocation7 + $0x80] sm:$0xff]  }
 0x176   :  { %2379 = vmatmul.mubr.bf16.vlgmr.msra.gmra.mxu1 %v770_v63 }
 0x177   :  { %2398 = vmatprep.mubr.msk.bf16.mxu1 %vm2786_vm0, %v2785_v13  ;;  %2383 = vmatpush3.bf16.msra.mxu1 %v2642_v25 }
 0x178   :  { %2252 = vmatpush3.bf16.msra.mxu0 %v2614_v2  ;;  %2384 = vmatprep.subr.bf16.mxu1 %v2785_v13 }
 0x179   :  { %2253 = vmatprep.subr.bf16.mxu0 %v2615_v3 }
 0x17b   :  { %2385 = vmatpush3.bf16.msra.mxu1 %v2644_v28 }
 0x17c   :  { %2254 = vmatpush3.bf16.msra.mxu0 %v2616_v4  ;;  %2386 = vmatprep.subr.bf16.mxu1 %v2785_v13 }
 0x17d   :  { %2255 = vmatprep.subr.bf16.mxu0 %v2617_v5 }
 0x17f   :  { %2387 = vmatpush3.bf16.msra.mxu1 %v2647_v35 }
 0x180   :  { %2256 = vmatpush3.bf16.msra.mxu0 %v2618_v6  ;;  %2388 = vmatprep.subr.bf16.mxu1 %v2785_v13 }
 0x181   :  { %2257 = vmatprep.subr.bf16.mxu0 %v2619_v7 }
 0x183   :  { %2389 = vmatpush3.bf16.msra.mxu1 %v2650_v38 }
 0x184   :  { %2258 = vmatpush3.bf16.msra.mxu0 %v2620_v8  ;;  %2390 = vmatprep.subr.bf16.mxu1 %v2785_v13 }
 0x185   :  { %2259 = vmatprep.subr.bf16.mxu0 %v2621_v9 }
 0x187   :  { %2391 = vmatpush3.bf16.msra.mxu1 %v2653_v42 }
 0x188   :  { %2260 = vmatpush3.bf16.msra.mxu0 %v2622_v10  ;;  %2392 = vmatprep.subr.bf16.mxu1 %v2785_v13 }
 0x189   :  { %2261 = vmatprep.subr.bf16.mxu0 %v2623_v11 }
 0x18b   :  { %2393 = vmatpush3.bf16.msra.mxu1 %v2656_v44 }
 0x18c   :  { %2262 = vmatpush3.bf16.msra.mxu0 %v2624_v12  ;;  %2394 = vmatprep.subr.bf16.mxu1 %v2785_v13 }
 0x18d   :  { %2263 = vmatprep.subr.bf16.mxu0 %v2625_v14 }
 0x18f   :  { %2395 = vmatpush3.bf16.msra.mxu1 %v2659_v48 }
 0x190   :  { %2264 = vmatpush3.bf16.msra.mxu0 %v2626_v15  ;;  %2396 = vmatprep.subr.bf16.mxu1 %v2785_v13 }
 0x191   :  { %2280 = vmatprep.subr.bf16.mxu0 %v2627_v16 }
 0x193   :  { %1366 = vmatmul.mubr.bf16.vlgmr.msra.gmra.mxu0 %v2872_v40  ;;  %v2652_v40 = vld [vmem:[#allocation7 + $0x28] sm:$0xff]   ;;  %2397 = vmatpush3.bf16.msra.mxu1 %v2662_v50 }
 0x194   :  { %2281 = vmatpush3.bf16.msra.mxu0 %v2628_v17  ;;  %1709 = vmatprep.mubr.bf16.mxu0 %v2850_v45  ;;  %v2638_v45 = vld [vmem:[#allocation8 + $0x10] sm:$0xff]  }
 0x195   :  { %2282 = vmatprep.subr.bf16.mxu0 %v2629_v18  ;;  %2402 = vmatprep.subr.bf16.mxu1 %v2785_v13 }
 0x196   :  { %2399 = vmatmul.mubr.bf16.vlgmr.msra.gmra.mxu1 %v2853_v52  ;;  %v2671_v52 = vld [vmem:[#allocation7 + $0x98] sm:$0xff]  }
 0x197   :  { %2418 = vmatprep.mubr.msk.bf16.mxu1 %vm2786_vm0, %v2785_v13  ;;  %2403 = vmatpush3.bf16.msra.mxu1 %v2667_v56 }
 0x198   :  { %2283 = vmatpush3.bf16.msra.mxu0 %v2630_v19  ;;  %2404 = vmatprep.subr.bf16.mxu1 %v2785_v13 }
 0x199   :  { %2284 = vmatprep.subr.bf16.mxu0 %v2631_v20 }
 0x19b   :  { %2405 = vmatpush3.bf16.msra.mxu1 %v2668_v57 }
 0x19c   :  { %2285 = vmatpush3.bf16.msra.mxu0 %v2632_v21  ;;  %2406 = vmatprep.subr.bf16.mxu1 %v2785_v13 }
 0x19d   :  { %2286 = vmatprep.subr.bf16.mxu0 %v2633_v22 }
 0x19f   :  { %2407 = vmatpush3.bf16.msra.mxu1 %v2669_v58 }
 0x1a0   :  { %2287 = vmatpush3.bf16.msra.mxu0 %v2634_v23  ;;  %2408 = vmatprep.subr.bf16.mxu1 %v2785_v13 }
 0x1a1   :  { %2288 = vmatprep.subr.bf16.mxu0 %v2635_v24 }
 0x1a3   :  { %2409 = vmatpush3.bf16.msra.mxu1 %v2670_v59 }
 0x1a4   :  { %2289 = vmatpush3.bf16.msra.mxu0 %v2636_v26  ;;  %2410 = vmatprep.subr.bf16.mxu1 %v2785_v13 }
 0x1a5   :  { %2290 = vmatprep.subr.bf16.mxu0 %v2637_v27 }
 0x1a7   :  { %2411 = vmatpush3.bf16.msra.mxu1 %v2671_v52 }
 0x1a8   :  { %2291 = vmatpush3.bf16.msra.mxu0 %v2638_v45  ;;  %2412 = vmatprep.subr.bf16.mxu1 %v2785_v13 }
 0x1a9   :  { %2292 = vmatprep.subr.bf16.mxu0 %v2639_v29 }
 0x1ab   :  { %2413 = vmatpush3.bf16.msra.mxu1 %v2672_v60 }
 0x1ac   :  { %2293 = vmatpush3.bf16.msra.mxu0 %v2640_v30  ;;  %2414 = vmatprep.subr.bf16.mxu1 %v2785_v13 }
 0x1ad   :  { %2294 = vmatprep.subr.bf16.mxu0 %v2641_v31 }
 0x1af   :  { %2415 = vmatpush3.bf16.msra.mxu1 %v2673_v61 }
 0x1b0   :  { %2295 = vmatpush3.bf16.msra.mxu0 %v2643_v32  ;;  %2416 = vmatprep.subr.bf16.mxu1 %v2785_v13 }
 0x1b1   :  { %2311 = vmatprep.subr.bf16.mxu0 %v2645_v33 }
 0x1b3   :  { %1710 = vmatmul.mubr.bf16.vlgmr.msra.gmra.mxu0 %v2846_v41  ;;  %v2655_v41 = vld [vmem:[#allocation7 + $0x20] sm:$0xff]   ;;  %2417 = vmatpush3.bf16.msra.mxu1 %v2674_v62 }
 0x1b4   :  { %2312 = vmatpush3.bf16.msra.mxu0 %v2646_v34 }
 0x1b5   :  { %2313 = vmatprep.subr.bf16.mxu0 %v2648_v36 }
 0x1b8   :  { %2314 = vmatpush3.bf16.msra.mxu0 %v2649_v37 }
 0x1b9   :  { %2315 = vmatprep.subr.bf16.mxu0 %v2651_v39 }
 0x1bc   :  { %2316 = vmatpush3.bf16.msra.mxu0 %v2652_v40 }
 0x1bd   :  { %2317 = vmatprep.subr.bf16.mxu0 %v2654_v43 }
 0x1c0   :  { %2318 = vmatpush3.bf16.msra.mxu0 %v2655_v41 }
 0x1c1   :  { %2319 = vmatprep.subr.bf16.mxu0 %v2657_v46 }
 0x1c4   :  { %2320 = vmatpush3.bf16.msra.mxu0 %v2658_v47 }
 0x1c5   :  { %2321 = vmatprep.subr.bf16.mxu0 %v2660_v1 }
 0x1c8   :  { %2322 = vmatpush3.bf16.msra.mxu0 %v2661_v49 }
 0x1c9   :  { %2323 = vmatprep.subr.bf16.mxu0 %v2663_v51 }
 0x1cc   :  { %2324 = vmatpush3.bf16.msra.mxu0 %v2664_v53 }
 0x1cd   :  { %2325 = vmatprep.subr.bf16.mxu0 %v2665_v54 }
 0x1d0   :  { %2326 = vmatpush3.bf16.msra.mxu0 %v2666_v55 }
 0x216   :  { %v1285_v63 = vpop.f32.mrf.mxu1 }
 0x218   :  { %v1287_v0 = vpop.f32.mrf.mxu1 }
 0x21a   :  { %v1289_v2 = vpop.f32.mrf.mxu1 }
 0x21c   :  { %v1290_v3 = vpop.f32.mrf.mxu1 }
 0x21d   :  { %v2216_v3 = vld [vmem:[%s2919_s5] ss:$0 sm:$0xff] }
 0x233   :  { %v1326_v4 = vpop.f32.mrf.mxu0 }
 0x234   :  { %v1327_v5 = vadd.f32 %v1326_v4, %v1285_v63 }
 0x235   :  { %v1328_v6 = vpop.f32.mrf.mxu0 }
 0x236   :  { %v1416_v7 = vmin.f32 %v1327_v5, 0.0  ;;  %v1329_v8 = vadd.f32 %v1328_v6, %v1287_v0  ;;  %v1407_v9 = vpop.f32.mrf.mxu1  ;;  %vm1413_vm4 = vcmp.gt.f32.partialorder %v1327_v5, 0.0 }
 0x237   :  { %v1330_v10 = vpop.f32.mrf.mxu0 }
 0x238   :  { %v1419_v11 = vmul.f32 1.442695, %v1416_v7  ;;  %v1417_v12 = vmin.f32 %v1329_v8, 0.0  ;;  %v2380_v14 = vpop.f32.mrf.mxu1  ;;  %vm1414_vm5 = vcmp.gt.f32.partialorder %v1329_v8, 0.0  ;;  %v2217_v7 = vld [vmem:[#allocation2] ss:$0 sm:$0xff] }
 0x239   :  { %v1331_v15 = vpop.f32.mrf.mxu0 }
 0x23a   :  { %2681 = vpow2.f32 %v1419_v11  ;;  %v1421_v16 = vmul.f32 1.442695, %v1417_v12  ;;  %v1410_v13 = vpop.f32.mrf.mxu1 }
 0x23c   :  { %2683 = vpow2.f32 %v1421_v16  ;;  %v2381_v17 = vpop.f32.mrf.mxu1 }
 0x247   :  { %v2682_v18 = vpop.eup %2681 }
 0x248   :  { %v2164_v19 = vadd.f32 -1.0, %v2682_v18 }
 0x249   :  { %v2684_v20 = vpop.eup %2683 }
 0x24a   :  { %v1428_v21 = vmul.f32 0.2, %v2164_v19  ;;  %v2165_v22 = vadd.f32 -1.0, %v2684_v20 }
 0x24c   :  { %v1429_v23 = vmul.f32 0.2, %v2165_v22  ;;  %v1431_v24 = vsel %vm1413_vm4, %v1327_v5, %v1428_v21 }
 0x24d   :  { %v1434_v27 = vpack.c.bf16 %v1431_v24, %v1431_v24 }
 0x24e   :  { %v1432_v25 = vsel %vm1414_vm5, %v1329_v8, %v1429_v23 }
 0x24f   :  { %v1435_v26 = vpack.c.bf16 %v1432_v25, %v1432_v25 }
 0x251   :  { %1933 = vmatprep.mubr.bf16.mxu0 %v1435_v26 }
 0x252   :  { %1934 = vmatmul.mubr.bf16.vlgmr.msra.gmra.mxu0 %v1434_v27 }
 0x253   :  { %v2265_v28 = vpop.f32.mrf.mxu0 }
 0x255   :  { %v2266_v45 = vpop.f32.mrf.mxu0 }
 0x256   :  { %v2267_v29 = vadd.f32 %v2266_v45, %v2265_v28  ;;  %v1751_v46 = vpop.f32.mrf.mxu1 }
 0x257   :  { %v2268_v30 = vpop.f32.mrf.mxu0 }
 0x258   :  { %v1408_v31 = vadd.f32 %v2267_v29, %v1407_v9  ;;  %v2400_v48 = vpop.f32.mrf.mxu1 }
 0x259   :  { %v2269_v32 = vpop.f32.mrf.mxu0 }
 0x25a   :  { %v1418_v33 = vmin.f32 %v1408_v31, 0.0  ;;  %vm1415_vm6 = vcmp.gt.f32.partialorder %v1408_v31, 0.0  ;;  %v1754_v1 = vpop.f32.mrf.mxu1 }
 0x25c   :  { %v1423_v34 = vmul.f32 1.442695, %v1418_v33  ;;  %v2401_v49 = vpop.f32.mrf.mxu1 }
 0x25e   :  { %2685 = vpow2.f32 %v1423_v34 }
 0x26b   :  { %v2686_v35 = vpop.eup %2685 }
 0x26c   :  { %v2166_v36 = vadd.f32 -1.0, %v2686_v35 }
 0x26e   :  { %v1430_v37 = vmul.f32 0.2, %v2166_v36 }
 0x270   :  { %v1433_v38 = vsel %vm1415_vm6, %v1408_v31, %v1430_v37 }
 0x271   :  { %v1436_v39 = vpack.c.bf16 %v1433_v38, %v1433_v38 }
 0x273   :  { %2419 = vmatmul.mubr.bf16.vlgmr.msra.gmra.mxu1 %v1436_v39  ;;  %v2296_v40 = vpop.f32.mrf.mxu0 }
 0x275   :  { %v2297_v42 = vpop.f32.mrf.mxu0 }
 0x276   :  { %v2298_v43 = vadd.f32 %v2297_v42, %v2296_v40 }
 0x277   :  { %v2299_v41 = vpop.f32.mrf.mxu0 }
 0x278   :  { %v1752_v47 = vadd.f32 %v2298_v43, %v1751_v46 }
 0x279   :  { %v2300_v44 = vpop.f32.mrf.mxu0 }
 0x312   :  { %v2327_v50 = vpop.f32.mrf.mxu0 }
 0x314   :  { %v2328_v51 = vpop.f32.mrf.mxu0 }
 0x315   :  { %v2329_v55 = vadd.f32 %v2328_v51, %v2327_v50 }
 0x316   :  { %v2330_v53 = vpop.f32.mrf.mxu0 }
 0x317   :  { %v1936_v56 = vadd.f32 %v2329_v55, %v1752_v47 }
 0x318   :  { %v2331_v54 = vpop.f32.mrf.mxu0 }
 0x333   :  { %v1975_v57 = vpop.f32.mrf.mxu1 }
 0x334   :  { %v1976_v58 = vadd.f32 %v1975_v57, %v1936_v56 }
 0x335   :  { %v2420_v59 = vpop.f32.mrf.mxu1 }
 0x336   :  { %v1982_v52 = vmin.f32 %v1976_v58, 0.0  ;;  %vm1981_vm7 = vcmp.gt.f32.partialorder %v1976_v58, 0.0 }
 0x337   :  { %v1978_v60 = vpop.f32.mrf.mxu1 }
 0x338   :  { %v1983_v61 = vmul.f32 1.442695, %v1982_v52 }
 0x339   :  { %v2421_v62 = vpop.f32.mrf.mxu1 }
 0x33a   :  { %2687 = vpow2.f32 %v1983_v61 }
 0x347   :  { %v2688_v63 = vpop.eup %2687 }
 0x348   :  { %v2215_v0 = vadd.f32 -1.0, %v2688_v63 }
 0x34a   :  { %v1986_v2 = vmul.f32 0.2, %v2215_v0 }
 0x34c   :  { %v1987_v4 = vsel %vm1981_vm7, %v1976_v58, %v1986_v2 }
 0x34d   :  { %v1995_v5 = vmul.f32 %v2216_v3, %v1987_v4 }
 0x34f   :  { %v1997_v6 = vsel %vm1996_vm8, %v1995_v5, 0.0 }
 0x350   :  { %1998 = vadd.xlane.f32.xlu0 %v1997_v6 }
 0x3d9   :  { %v1999_v8 = vpop.xlane.xlu0 %1998 }
 0x3da   :  { %v2007_v9 = vadd.f32 %v2217_v7, %v1999_v8 }
 0x3dc   :  { %2009 = vst.msk [vmem:[%s2921_s7] sm:$0xf] %vm2008_vm9, %v2007_v9 }
 0x3dd   :  { %2014 = vsyncpa [#allocation4], 1 }
 0x3de   :  { %2015 = vsyncpa [#allocation6], 1 }
 0x3df   :  { %2016 = vsyncpa [#allocation9], 1 }

</bundles_post_ra>
